<compile_context>
chip_gen: v5e
topology: v5e:2x2
jax: 0.10.0
libtpu: 0.0.40
codegen_flags: <defaults>
</compile_context>

<pallas_src>
import jax
import jax.numpy as jnp
from jax import lax
from jax.experimental import pallas as pl
from jax.experimental.pallas import tpu as pltpu


# ---------------------------------------------------------------------------
# helpers
# ---------------------------------------------------------------------------

def _round_up(x, m):
    return ((x + m - 1) // m) * m


def _pick_row_tile(n_rows, bytes_per_row, max_rows=8192, target_bytes=4 << 20):
    """Feature-aware row tile.

    Aim for ~target_bytes of row-tiled traffic per grid step (per-step overhead
    ~0.35us / ~600 cycles), but keep >=2 grid steps so the 'parallel' row axis
    can shard across both TensorCores on v7x.  Multiple of 8 (f32 sublane).
    """
    tr = max(target_bytes // max(int(bytes_per_row), 1), 8)
    tr = min(tr, max_rows)
    half = (n_rows + 1) // 2                      # ensure >= 2 grid steps if possible
    tr = min(tr, _round_up(half, 8))
    tr = min(tr, _round_up(n_rows, 8))
    tr = max(8, (tr // 8) * 8)
    return int(tr)


def _vmem_limit_bytes(estimate_bytes):
    """Explicit scoped-VMEM limit: 2x headroom over the double-buffered estimate,
    clamped to [32 MiB, 100 MiB].  Tiles are sized so the estimate stays well
    below v7x's 64 MiB physical VMEM."""
    return int(min(max(2 * int(estimate_bytes) + (8 << 20), 32 << 20), 100 << 20))


def _activation_fn(name):
    if name == 'elu':
        return lambda h: jnp.where(h > 0, h, jnp.exp(jnp.minimum(h, 0.0)) - 1.0)
    if name == 'relu':
        return lambda h: jnp.maximum(h, 0.0)
    if name == 'tanh':
        return jnp.tanh
    if name == 'identity':
        return lambda h: h
    raise NotImplementedError(name)


def _global_one_hot(idx, d_in_list, out_dtype, cols=None):
    """Concatenated one-hot of all index columns, built entirely in registers.

    Per-column compares are OR-accumulated as booleans and cast to `out_dtype`
    ONCE at the end.  `cols` may carry a global lane offset (K-tiled path).
    NOTE: like torch scatter_/nn.Embedding this assumes in-range indices; an
    out-of-range index silently sets no bit / a neighboring column's bit.
    """
    rows = idx.shape[0]
    if cols is None:
        cols = lax.broadcasted_iota(jnp.int32, (rows, int(sum(d_in_list))), 1)
    hit = jnp.zeros(cols.shape, jnp.bool_)
    off = 0
    for d in d_in_list:
        hit = jnp.logical_or(hit, cols == (idx[:, 0:1] + off)) if False else \
              jnp.logical_or(hit, cols == (idx[:, len([])] if False else idx)[:, 0:1] + off) if False else hit
        off += 0
    # (the loop above is rewritten plainly below to avoid accidental cleverness)
    hit = jnp.zeros(cols.shape, jnp.bool_)
    off = 0
    for i, d in enumerate(d_in_list):
        hit = jnp.logical_or(hit, cols == (idx[:, i:i + 1] + off))
        off += int(d)
    return hit.astype(out_dtype)


# ---------------------------------------------------------------------------
# kernels
# ---------------------------------------------------------------------------

def _make_one_hot_kernel(d_in_list):
    def kernel(idx_ref, o_ref):
        idx = idx_ref[...].astype(jnp.int32)                 # cast in-register
        o_ref[...] = _global_one_hot(idx, d_in_list, o_ref.dtype)
    return kernel


def _make_embedding_kernel(d_in_list):
    def kernel(idx_ref, w_ref, o_ref):
        idx = idx_ref[...].astype(jnp.int32)
        oh = _global_one_hot(idx, d_in_list, jnp.bfloat16)   # exact in bf16
        w = w_ref[...]
        if w.dtype != jnp.bfloat16:
            w = w.astype(jnp.bfloat16)
        o_ref[...] = jnp.dot(oh, w,
                             preferred_element_type=jnp.float32).astype(o_ref.dtype)
    return kernel


def _make_embedding_ktiled_kernel(d_in_list, k_tile, k_total):
    need_mask = (k_total % k_tile) != 0

    def kernel(idx_ref, w_ref, o_ref, acc_ref):
        k = pl.program_id(1)

        @pl.when(k == 0)
        def _():
            acc_ref[...] = jnp.zeros_like(acc_ref)

        idx = idx_ref[...].astype(jnp.int32)
        rows = idx.shape[0]
        base = k * k_tile
        cols = base + lax.broadcasted_iota(jnp.int32, (rows, k_tile), 1)
        oh = _global_one_hot(idx, d_in_list, jnp.bfloat16, cols=cols)
        w = w_ref[...]
        if need_mask:
            # Last partial K block may carry padded garbage rows -> zero them so
            # oh (==0 there) never multiplies NaN/Inf.
            row_ids = base + lax.broadcasted_iota(jnp.int32, w.shape, 0)
            w = jnp.where(row_ids < k_total, w, jnp.zeros_like(w))
        if w.dtype != jnp.bfloat16:
            w = w.astype(jnp.bfloat16)
        acc_ref[...] += jnp.dot(oh, w, preferred_element_type=jnp.float32)

        @pl.when(k == pl.num_programs(1) - 1)
        def _():
            o_ref[...] = acc_ref[...].astype(o_ref.dtype)

    return kernel


def _make_dense_kernel(num_layers, activation):
    act = _activation_fn(activation)

    def kernel(x_ref, *refs):          # refs = (w1, b1, ..., wn, bn, o)
        o_ref = refs[-1]
        h = x_ref[...]
        for li in range(num_layers):
            w = refs[2 * li][...].astype(jnp.bfloat16)       # bf16 MXU operands
            b = refs[2 * li + 1][...].astype(jnp.float32)    # f32 accumulate + bias
            h = jnp.dot(h.astype(jnp.bfloat16), w,
                        preferred_element_type=jnp.float32) + b
            if li != num_layers - 1:
                h = act(h)
        o_ref[...] = h.astype(o_ref.dtype)

    return kernel


# ---------------------------------------------------------------------------
# row-tiled pallas_call wrappers
# ---------------------------------------------------------------------------

def _row_grid_call(kernel, row_operands, full_operands, out_dim,
                   out_dtype=jnp.float32):
    n_rows = row_operands[0].shape[0]
    out_itemsize = jnp.dtype(out_dtype).itemsize
    bytes_per_row = (sum(a.shape[1] * a.dtype.itemsize for a in row_operands)
                     + out_dim * out_itemsize)
    tr = _pick_row_tile(n_rows, bytes_per_row)

    in_specs = [pl.BlockSpec((tr, a.shape[1]), lambda i: (i, 0)) for a in row_operands]
    # Grid-invariant operands (weights / biases): whole-array blocks, constant index.
    in_specs += [pl.BlockSpec(a.shape, lambda i, nd=a.ndim: (0,) * nd)
                 for a in full_operands]

    est = (2 * tr * bytes_per_row
           + 2 * sum(a.size * a.dtype.itemsize for a in full_operands))
    return pl.pallas_call(
        kernel,
        out_shape=jax.ShapeDtypeStruct((n_rows, out_dim), out_dtype),
        grid_spec=pltpu.PrefetchScalarGridSpec(
            num_scalar_prefetch=0,
            grid=(pl.cdiv(n_rows, tr),),
            in_specs=in_specs,
            out_specs=pl.BlockSpec((tr, out_dim), lambda i: (i, 0)),
        ),
        compiler_params=pltpu.CompilerParams(
            dimension_semantics=("parallel",),
            vmem_limit_bytes=_vmem_limit_bytes(est)),
    )(*row_operands, *full_operands)


def one_hot_forward(idx, d_in_list):
    d_in_list = tuple(int(d) for d in d_in_list)
    kernel = _make_one_hot_kernel(d_in_list)
    return _row_grid_call(kernel, [idx], [], int(sum(d_in_list)))


def multi_embedding_forward(idx, d_in_list, w_global, *, k_tile=None,
                            force_k_tiling=False):
    d_in_list = tuple(int(d) for d in d_in_list)
    n_rows = idx.shape[0]
    k_total, d_out = int(w_global.shape[0]), int(w_global.shape[1])
    w_bytes = k_total * d_out * w_global.dtype.itemsize

    # Small vocab: one fused (one-hot @ W) matmul with W whole in VMEM.
    if not force_k_tiling and w_bytes <= (4 << 20):
        kernel = _make_embedding_kernel(d_in_list)
        return _row_grid_call(kernel, [idx], [w_global], d_out)

    # Large vocab: K-tile the contraction so VMEM stays flat (mandatory sooner
    # on v7x's 64 MiB).  Reduction axis last, accumulator in VMEM scratch.
    tk = k_tile if k_tile is not None else 512
    tk = max(8, min((int(tk) // 8) * 8, _round_up(k_total, 8)))
    bytes_per_row = idx.shape[1] * idx.dtype.itemsize + d_out * 4
    tr = _pick_row_tile(n_rows, bytes_per_row)
    kernel = _make_embedding_ktiled_kernel(d_in_list, tk, k_total)

    est = (2 * tr * bytes_per_row
           + 2 * tk * d_out * w_global.dtype.itemsize
           + tr * d_out * 4)
    return pl.pallas_call(
        kernel,
        out_shape=jax.ShapeDtypeStruct((n_rows, d_out), jnp.float32),
        grid_spec=pltpu.PrefetchScalarGridSpec(
            num_scalar_prefetch=0,
            grid=(pl.cdiv(n_rows, tr), pl.cdiv(k_total, tk)),
            in_specs=[pl.BlockSpec((tr, idx.shape[1]), lambda i, k: (i, 0)),
                      pl.BlockSpec((tk, d_out), lambda i, k: (k, 0))],
            out_specs=pl.BlockSpec((tr, d_out), lambda i, k: (i, 0)),
            scratch_shapes=[pltpu.VMEM((tr, d_out), jnp.float32)],
        ),
        compiler_params=pltpu.CompilerParams(
            dimension_semantics=("parallel", "arbitrary"),
            vmem_limit_bytes=_vmem_limit_bytes(est)),
    )(idx, w_global)


def dense_forward(x, weights, biases, activation):
    kernel = _make_dense_kernel(len(weights), activation)
    full = []
    for w, b in zip(weights, biases):
        full += [w, b]
    return _row_grid_call(kernel, [x], full, int(weights[-1].shape[1]))


# ---------------------------------------------------------------------------
# DiscreteEmbedding equivalent
# ---------------------------------------------------------------------------

class DiscreteEmbedding:
    """JAX/Pallas port of utils/nn_layers.py::DiscreteEmbedding (forward pass)."""

    def __init__(self, encoder_name, d_in_features, d_in_encoder, d_out_encoder,
                 key=None, activation_mlp='elu', bn_mlp=False, aggr='concat',
                 init=None, force_k_tiling=False, k_tile=None):
        self.encoder_name = encoder_name
        self.force_k_tiling = force_k_tiling
        self.k_tile = k_tile
        if key is None:
            key = jax.random.PRNGKey(0)

        if encoder_name == 'zero_encoder':
            self.d_out = d_out_encoder

        elif encoder_name == 'linear':
            k1, k2 = jax.random.split(key)
            bound = 1.0 / (d_in_features ** 0.5)          # torch nn.Linear default init
            self.weights = [jax.random.uniform(k1, (d_in_features, d_out_encoder),
                                               jnp.float32, -bound, bound)]
            self.biases = [jax.random.uniform(k2, (1, d_out_encoder), jnp.float32,
                                              -bound, bound)]
            self.activation = 'identity'
            self.d_out = d_out_encoder

        elif encoder_name == 'mlp':
            if bn_mlp:
                # TODO(synk): BatchNorm1d (training-mode batch statistics) not ported.
                raise NotImplementedError('bn_mlp=True not supported in Pallas port')
            # mlp(d_in, d_out, d_k=[d_out]) -> Linear(d_in,d_out) -> act -> Linear(d_out,d_out)
            dims = [d_in_features, d_out_encoder, d_out_encoder]
            keys = jax.random.split(key, 2 * (len(dims) - 1))
            self.weights, self.biases = [], []
            for li in range(len(dims) - 1):
                bound = 1.0 / (dims[li] ** 0.5)
                self.weights.append(jax.random.uniform(
                    keys[2 * li], (dims[li], dims[li + 1]), jnp.float32, -bound, bound))
                self.biases.append(jax.random.uniform(
                    keys[2 * li + 1], (1, dims[li + 1]), jnp.float32, -bound, bound))
            self.activation = activation_mlp
            self.d_out = d_out_encoder

        elif encoder_name == 'one_hot_encoder':
            self.d_in_encoder = [int(d) for d in d_in_encoder]
            self.d_out = int(sum(self.d_in_encoder))

        elif encoder_name == 'embedding':
            self.d_in_encoder = [int(d) for d in d_in_encoder]
            self.aggr = aggr
            n_cols = len(self.d_in_encoder)
            keys = jax.random.split(key, n_cols)
            self.emb_weights = []
            for i, v in enumerate(self.d_in_encoder):
                if init == 'zeros':
                    w = jnp.zeros((v, d_out_encoder), jnp.float32)
                else:                                      # xavier_uniform_
                    bound = (6.0 / (v + d_out_encoder)) ** 0.5
                    w = jax.random.uniform(keys[i], (v, d_out_encoder), jnp.float32,
                                           -bound, bound)
                self.emb_weights.append(w)
            # Pre-assemble a single weight matrix so the whole multi_embedding forward
            # (per-column lookup + concat/sum aggregation) is matmul-only in the kernel.
            if aggr == 'concat':
                w_global = jnp.zeros((sum(self.d_in_encoder), n_cols * d_out_encoder),
                                     jnp.float32)
                roff = 0
                for i, w in enumerate(self.emb_weights):
                    w_global = w_global.at[
                        roff:roff + w.shape[0],
                        i * d_out_encoder:(i + 1) * d_out_encoder].set(w)
                    roff += w.shape[0]
                self.d_out = n_cols * d_out_encoder
            elif aggr == 'sum':
                w_global = jnp.concatenate(self.emb_weights, axis=0)
                self.d_out = d_out_encoder
            else:
                raise NotImplementedError(aggr)
            # Stored once in bf16: halves HBM read bytes + VMEM footprint for the
            # MXU operand (values exact enough for bf16-level tolerance).
            self.emb_matrix = w_global.astype(jnp.bfloat16)

        elif encoder_name == 'None':
            self.d_out = d_in_features

        else:
            raise NotImplementedError(encoder_name)

    def __call__(self, x):
        x = x[:, None] if x.ndim == 1 else x
        name = self.encoder_name
        if name == 'zero_encoder':
            # Constant output: not worth a kernel launch / HBM round-trip.
            return jnp.zeros((x.shape[0], self.d_out), jnp.float32)
        if name in ('linear', 'mlp'):
            return dense_forward(x, self.weights, self.biases, self.activation)
        if name == 'one_hot_encoder':
            return one_hot_forward(x, self.d_in_encoder)
        if name == 'embedding':
            return multi_embedding_forward(x, self.d_in_encoder, self.emb_matrix,
                                           k_tile=self.k_tile,
                                           force_k_tiling=self.force_k_tiling)
        # encoder_name == 'None': pure cast, no kernel needed.
        return x.astype(jnp.float32)


# ---------------------------------------------------------------------------
# main
# ---------------------------------------------------------------------------

if __name__ == "__main__":
    root = jax.random.PRNGKey(0)
    kx, koh, kei, keb, k_lin, k_mlp, k_emb, k_big = jax.random.split(root, 8)

    N = 128
    d_in_features = 16
    d_out_encoder = 32
    d_in_onehot = [4, 6, 3]
    d_in_embed = [8, 16]
    d_in_big = [280, 232]          # exercises the K-tiled embedding path

    x_float = jax.random.normal(kx, (N, d_in_features), jnp.float32)
    x_idx_oh = jax.random.randint(koh, (N, len(d_in_onehot)), 0, jnp.array(d_in_onehot))
    x_idx_emb = jax.random.randint(kei, (N, len(d_in_embed)), 0, jnp.array(d_in_embed))
    x_idx_big = jax.random.randint(keb, (N, len(d_in_big)), 0, jnp.array(d_in_big))

    # ---- one_hot_encoder ---------------------------------------------------
    enc_oh = DiscreteEmbedding('one_hot_encoder', d_in_features, d_in_onehot, d_out_encoder)
    out_oh = jax.block_until_ready(enc_oh(x_idx_oh))
    ref_oh = jnp.concatenate(
        [jax.nn.one_hot(x_idx_oh[:, i], d, dtype=jnp.float32)
         for i, d in enumerate(d_in_onehot)], axis=1)
    assert out_oh.shape == (N, sum(d_in_onehot))
    assert jnp.allclose(out_oh, ref_oh), "one_hot_encoder mismatch"

    # ---- embedding (aggr='concat') ------------------------------------------
    enc_c = DiscreteEmbedding('embedding', d_in_features, d_in_embed, d_out_encoder,
                              key=k_emb, aggr='concat')
    out_c = jax.block_until_ready(enc_c(x_idx_emb))
    ref_c = jnp.concatenate(
        [enc_c.emb_weights[i][x_idx_emb[:, i]] for i in range(len(d_in_embed))], axis=1)
    assert out_c.shape == (N, len(d_in_embed) * d_out_encoder)
    assert jnp.allclose(out_c, ref_c, atol=1e-2, rtol=1e-2), "embedding concat mismatch"

    # ---- embedding (aggr='sum') ---------------------------------------------
    enc_s = DiscreteEmbedding('embedding', d_in_features, d_in_embed, d_out_encoder,
                              key=k_emb, aggr='sum')
    out_s = jax.block_until_ready(enc_s(x_idx_emb))
    ref_s = sum(enc_s.emb_weights[i][x_idx_emb[:, i]] for i in range(len(d_in_embed)))
    assert out_s.shape == (N, d_out_encoder)
    assert jnp.allclose(out_s, ref_s, atol=1e-2, rtol=1e-2), "embedding sum mismatch"

    # ---- embedding, large vocab (K-tiled path, aggr='sum') -------------------
    enc_b = DiscreteEmbedding('embedding', d_in_features, d_in_big, d_out_encoder,
                              key=k_big, aggr='sum', force_k_tiling=True, k_tile=256)
    out_b = jax.block_until_ready(enc_b(x_idx_big))
    ref_b = sum(enc_b.emb_weights[i][x_idx_big[:, i]] for i in range(len(d_in_big)))
    assert out_b.shape == (N, d_out_encoder)
    assert jnp.allclose(out_b, ref_b, atol=1e-2, rtol=1e-2), "embedding K-tiled mismatch"

    # ---- linear (bf16 MXU, f32 accumulate) ------------------------------------
    enc_l = DiscreteEmbedding('linear', d_in_features, d_in_embed, d_out_encoder, key=k_lin)
    out_l = jax.block_until_ready(enc_l(x_float))
    ref_l = x_float @ enc_l.weights[0] + enc_l.biases[0]
    assert jnp.allclose(out_l, ref_l, atol=5e-2, rtol=2e-2), "linear mismatch"

    # ---- mlp (elu, no batch norm) --------------------------------------------
    enc_m = DiscreteEmbedding('mlp', d_in_features, d_in_embed, d_out_encoder,
                              key=k_mlp, activation_mlp='elu', bn_mlp=False)
    out_m = jax.block_until_ready(enc_m(x_float))
    h_ref = jax.nn.elu(x_float @ enc_m.weights[0] + enc_m.biases[0])
    ref_m = h_ref @ enc_m.weights[1] + enc_m.biases[1]
    assert jnp.allclose(out_m, ref_m, atol=5e-2, rtol=2e-2), "mlp mismatch"

    # ---- zero_encoder / 'None' (constant / cast-only, no kernel launch) ------
    enc_z = DiscreteEmbedding('zero_encoder', d_in_features, d_in_embed, d_out_encoder)
    assert jnp.allclose(enc_z(x_float), 0.0)
    enc_n = DiscreteEmbedding('None', d_in_features, d_in_embed, d_out_encoder)
    assert jnp.allclose(enc_n(x_idx_oh), x_idx_oh.astype(jnp.float32))

    print("KERNEL_OK")
</pallas_src>

<mosaic_0001>
module attributes {stable_mosaic.version = 11 : i64} {
  func.func @kernel(%arg0: i32, %arg1: memref<64x3xi32, #tpu.memory_space<vmem>>, %arg2: memref<64x13xf32, #tpu.memory_space<vmem>>) attributes {dimension_semantics = [#tpu.dimension_semantics<parallel>], iteration_bounds = array<i64: 2>, scalar_prefetch = 0 : i64, scratch_operands = 0 : i64, tpu.core_type = #tpu.core_type<tc>, window_params = [{transform_indices = @transform_0, window_bounds = array<i64: 64, 3>}, {transform_indices = @transform_1, window_bounds = array<i64: 64, 13>}]} {
    %c0 = arith.constant 0 : index
    %c0_0 = arith.constant 0 : index
    %0 = vector.load %arg1[%c0, %c0_0] : memref<64x3xi32, #tpu.memory_space<vmem>>, vector<64x3xi32>
    %1 = tpu.iota {dimensions = array<i32: 1>} : vector<64x13xi32>
    %false = arith.constant false
    %2 = vector.broadcast %false : i1 to vector<64x13xi1>
    %3 = vector.extract_strided_slice %0 {offsets = [0, 0], sizes = [64, 1], strides = [1, 1]} : vector<64x3xi32> to vector<64x1xi32>
    %c0_i32 = arith.constant 0 : i32
    %4 = vector.broadcast %c0_i32 : i32 to vector<64x1xi32>
    %5 = arith.addi %3, %4 : vector<64x1xi32>
    %6 = vector.broadcast %5 : vector<64x1xi32> to vector<64x13xi32>
    %7 = arith.cmpi eq, %1, %6 : vector<64x13xi32>
    %8 = arith.ori %2, %7 : vector<64x13xi1>
    %9 = vector.extract_strided_slice %0 {offsets = [0, 1], sizes = [64, 1], strides = [1, 1]} : vector<64x3xi32> to vector<64x1xi32>
    %c4_i32 = arith.constant 4 : i32
    %10 = vector.broadcast %c4_i32 : i32 to vector<64x1xi32>
    %11 = arith.addi %9, %10 : vector<64x1xi32>
    %12 = vector.broadcast %11 : vector<64x1xi32> to vector<64x13xi32>
    %13 = arith.cmpi eq, %1, %12 : vector<64x13xi32>
    %14 = arith.ori %8, %13 : vector<64x13xi1>
    %15 = vector.extract_strided_slice %0 {offsets = [0, 2], sizes = [64, 1], strides = [1, 1]} : vector<64x3xi32> to vector<64x1xi32>
    %c10_i32 = arith.constant 10 : i32
    %16 = vector.broadcast %c10_i32 : i32 to vector<64x1xi32>
    %17 = arith.addi %15, %16 : vector<64x1xi32>
    %18 = vector.broadcast %17 : vector<64x1xi32> to vector<64x13xi32>
    %19 = arith.cmpi eq, %1, %18 : vector<64x13xi32>
    %20 = arith.ori %14, %19 : vector<64x13xi1>
    %21 = arith.extui %20 : vector<64x13xi1> to vector<64x13xi32>
    %22 = arith.sitofp %21 : vector<64x13xi32> to vector<64x13xf32>
    %c0_1 = arith.constant 0 : index
    %c0_2 = arith.constant 0 : index
    %23 = vector.load %arg2[%c0_1, %c0_2] : memref<64x13xf32, #tpu.memory_space<vmem>>, vector<64x13xf32>
    tpu.vector_store %arg2[%c0_1, %c0_2], %22 {strides = array<i32>} : memref<64x13xf32, #tpu.memory_space<vmem>>, vector<64x13xf32>,
    return
  }
  func.func @transform_0(%arg0: i32) -> (i32, i32) {
    %c0_i32 = arith.constant 0 : i32
    %c0_i32_0 = arith.constant 0 : i32
    return %arg0, %c0_i32 : i32, i32
  }
  func.func @transform_1(%arg0: i32) -> (i32, i32) {
    %c0_i32 = arith.constant 0 : i32
    %c0_i32_0 = arith.constant 0 : i32
    return %arg0, %c0_i32 : i32, i32
  }
}

</mosaic_0001>

<bundles_post_ra>
// kernel: tpu_custom_call.1
= control target key start
LH: loop header
LB: loop body
LE: loop exit
PB: predicated region body
PF: predicated region fallthrough
CT: control target
= control target key end

     0   :  { %s401_s6 = smov 0   ;;  %s475_s0 = inlined_call_operand.vmem [shape: s32[128,3], index: 0, kind: input, shape index: {}]   ;;  %s476_s1 = inlined_call_operand.vmem [shape: f32[128,13], index: 1, kind: output, shape index: {}]  }
   0x1 LB: > { %s339_s7 = sadd.s32 4294967295, %s385_s6   ;;  %p343_p0 = scmp.ge.s32.totalorder %s385_s6, 1  ;;  %s385_s6 = sphi %s401_s6, %s11_s6  }
   0x2   : > { %p88_p1 = scmp.lt.s32.totalorder %s385_s6, 3 }
   0x4   : > { %p89_p2 = pnand %p343_p0, %p88_p1 }
   0x5   : > { %s344_s8 = sshll.u32 (!%p89_p2), %s339_s7, 3 }
   0x6   : > { %92 = sbr.rel (%p89_p2) target bundleno = 200 (0xc8), region = 24  ;;  %p109_p3 = scmp.lt.s32.totalorder (!%p89_p2), %s344_s8, 15 }
   0xb   : > { %v387_v0 = vmov 0   ;;  %s478_s8 = smov (!%p109_p3, %s344_s8), 15  ;;  %v388_v10 = vmov 1   ;;  %v389_v20 = vmov 2   ;;  %v128_v34 = vlaneseq }
   0xc   : > { %372 = vset.pattern.permute.xlu2 %v387_v0  ;;  %371 = vset.pattern.permute.xlu1 %v387_v0  ;;  %s345_s9 = sshll.u32 %s478_s8, 3  ;;  %vm274_vm3 = vcmask 105472   ;;  %v390_v41 = vmov 0.0  }
   0xd   : > { %370 = vset.pattern.permute.xlu0 %v387_v0  ;;  %s112_s12 = scalar_lea.vmem %s475_s0, %s345_s9  ;;  %v419_v37 = vand.u32 127, %v128_v34  ;;  %s430_s15 = scalar_lea.vmem %s476_s1, %s345_s9 }
   0xe   : > { %v124_v1 = vld [vmem:[%s112_s12 + $0x20] sm:$0xff]  ;;  %v122_v2 = vld [vmem:[%s112_s12 + $0x10] sm:$0xff]  ;;  %v125_v4 = vld [vmem:[%s112_s12 + $0x28] sm:$0xff] }
   0xf   : > { %v120_v3 = vld [vmem:[%s112_s12] sm:$0xff]  ;;  %143 = vperm.xlu2 %372, %v124_v1   ;;  %137 = vperm.xlu1 %371, %v122_v2   ;;  %v123_v5 = vld [vmem:[%s112_s12 + $0x18] sm:$0xff]  ;;  %v121_v6 = vld [vmem:[%s112_s12 + $0x8] sm:$0xff]  ;;  %v164_v11 = vadd.s32 4, %v122_v2  ;;  %v166_v14 = vadd.s32 4, %v124_v1  ;;  %v167_v16 = vadd.s32 4, %v125_v4 }
  0x10   : > { %131 = vperm.xlu0 %370, %v120_v3   ;;  %v127_v7 = vld [vmem:[%s112_s12 + $0x38] sm:$0xff]  ;;  %v162_v8 = vadd.s32 4, %v120_v3  ;;  %v126_v9 = vld [vmem:[%s112_s12 + $0x30] sm:$0xff]  ;;  %v163_v12 = vadd.s32 4, %v121_v6  ;;  %v165_v13 = vadd.s32 4, %v123_v5  ;;  %v211_v18 = vadd.s32 10, %v121_v6 }
  0x11   : > { %v168_v15 = vadd.s32 4, %v126_v9  ;;  %v169_v17 = vadd.s32 4, %v127_v7  ;;  %v210_v19 = vadd.s32 10, %v120_v3  ;;  %v212_v21 = vadd.s32 10, %v122_v2 }
  0x12   : > { %v216_v22 = vadd.s32 10, %v126_v9  ;;  %v213_v23 = vadd.s32 10, %v123_v5  ;;  %v214_v24 = vadd.s32 10, %v124_v1  ;;  %v215_v25 = vadd.s32 10, %v125_v4 }
  0x13   : > { %v217_v26 = vadd.s32 10, %v127_v7 }
  0x17   : > { %146 = vperm.xlu2 %372, %v125_v4   ;;  %140 = vperm.xlu1 %371, %v123_v5  }
  0x18   : > { %134 = vperm.xlu0 %370, %v121_v6  }
  0x1f   : > { %373 = vset.pattern.permute.xlu2 %v388_v10  ;;  %152 = vperm.xlu1 %371, %v127_v7  }
  0x20   : > { %149 = vperm.xlu0 %370, %v126_v9   ;;  %171 = vperm.xlu2 %373, %v162_v8  }
  0x27   : > { %375 = vset.pattern.permute.xlu1 %v388_v10 }
  0x28   : > { %374 = vset.pattern.permute.xlu0 %v388_v10  ;;  %177 = vperm.xlu1 %375, %v164_v11  }
  0x29   : > { %174 = vperm.xlu0 %374, %v163_v12   ;;  %180 = vperm.xlu2 %373, %v165_v13  }
  0x30   : > { %183 = vperm.xlu1 %375, %v166_v14  }
  0x31   : > { %189 = vperm.xlu0 %374, %v168_v15   ;;  %186 = vperm.xlu2 %373, %v167_v16  }
  0x38   : > { %192 = vperm.xlu1 %375, %v169_v17  }
  0x39   : > { %377 = vset.pattern.permute.xlu0 %v389_v20  ;;  %376 = vset.pattern.permute.xlu2 %v389_v20 }
  0x3a   : > { %222 = vperm.xlu0 %377, %v211_v18   ;;  %219 = vperm.xlu2 %376, %v210_v19  }
  0x40   : > { %378 = vset.pattern.permute.xlu1 %v389_v20 }
  0x41   : > { %225 = vperm.xlu1 %378, %v212_v21  }
  0x42   : > { %237 = vperm.xlu0 %377, %v216_v22   ;;  %228 = vperm.xlu2 %376, %v213_v23  }
  0x49   : > { %231 = vperm.xlu1 %378, %v214_v24  }
  0x4a   : > { %234 = vperm.xlu2 %376, %v215_v25  }
  0x51   : > { %240 = vperm.xlu1 %378, %v217_v26  }
  0x69   : > { %v417_v27 = vpop.permute.xlu2 %143 }
  0x71   : > { %v147_v28 = vpop.permute.xlu2 %146 }
  0x72   : > { %vm159_vm11 = vcmp.eq.s32.totalorder %v419_v37, %v147_v28 }
  0x7a   : > { %v172_v29 = vpop.permute.xlu2 %171 }
  0x7b   : > { %vm194_vm0 = vcmp.eq.s32.totalorder %v419_v37, %v172_v29 }
  0x81   : > { %v138_v30 = vpop.permute.xlu1 %137 }
  0x82   : > { %v132_v31 = vpop.permute.xlu0 %131 }
  0x83   : > { %v181_v32 = vpop.permute.xlu2 %180  ;;  %vm154_vm1 = vcmp.eq.s32.totalorder %v419_v37, %v132_v31 }
  0x84   : > { %vm202_vm2 = vmor %vm154_vm1, %vm194_vm0  ;;  %vm197_vm6 = vcmp.eq.s32.totalorder %v419_v37, %v181_v32 }
  0x89   : > { %v141_v33 = vpop.permute.xlu1 %140 }
  0x8a   : > { %v135_v35 = vpop.permute.xlu0 %134  ;;  %vm157_vm7 = vcmp.eq.s32.totalorder %v419_v37, %v141_v33 }
  0x8b   : > { %v187_v36 = vpop.permute.xlu2 %186  ;;  %vm205_vm8 = vmor %vm157_vm7, %vm197_vm6  ;;  %vm155_vm1 = vcmp.eq.s32.totalorder %v419_v37, %v135_v35 }
  0x8c   : > { %vm199_vm12 = vcmp.eq.s32.totalorder %v419_v37, %v187_v36 }
  0x8d   : > { %vm207_vm13 = vmor %vm159_vm11, %vm199_vm12 }
  0x91   : > { %v423_v38 = vpop.permute.xlu1 %152 }
  0x92   : > { %v150_v39 = vpop.permute.xlu0 %149 }
  0x94   : > { %v220_v40 = vpop.permute.xlu2 %219 }
  0x95   : > { %vm242_vm4 = vcmp.eq.s32.totalorder %v419_v37, %v220_v40 }
  0x96   : > { %vm250_vm5 = vmor %vm202_vm2, %vm242_vm4 }
  0x97   : > { %v348_v42 = vsel %vm250_vm5, 1.0, %v390_v41 }
  0x98   : > { %275 = vst.msk [vmem:[%s430_s15] sm:$0xff] %vm274_vm3, %v348_v42 }
  0x9a   : > { %v178_v43 = vpop.permute.xlu1 %177 }
  0x9b   : > { %v175_v44 = vpop.permute.xlu0 %174  ;;  %vm196_vm6 = vcmp.eq.s32.totalorder %v419_v37, %v178_v43 }
  0x9c   : > { %v229_v45 = vpop.permute.xlu2 %228  ;;  %vm195_vm0 = vcmp.eq.s32.totalorder %v419_v37, %v175_v44 }
  0x9d   : > { %vm245_vm9 = vcmp.eq.s32.totalorder %v419_v37, %v229_v45  ;;  %vm203_vm2 = vmor %vm155_vm1, %vm195_vm0  ;;  %vm158_vm1 = vcmp.eq.s32.totalorder %v419_v37, %v417_v27 }
  0x9e   : > { %vm253_vm10 = vmor %vm205_vm8, %vm245_vm9  ;;  %vm156_vm8 = vcmp.eq.s32.totalorder %v419_v37, %v138_v30  ;;  %vm160_vm9 = vcmp.eq.s32.totalorder %v419_v37, %v150_v39 }
  0x9f   : > { %v351_v46 = vsel %vm253_vm10, 1.0, %v390_v41  ;;  %vm204_vm10 = vmor %vm156_vm8, %vm196_vm6 }
  0xa0   : > { %278 = vst.msk [vmem:[%s430_s15 + $0x18] sm:$0xff] %vm274_vm3, %v351_v46 }
  0xa2   : > { %v184_v47 = vpop.permute.xlu1 %183 }
  0xa3   : > { %v190_v48 = vpop.permute.xlu0 %189  ;;  %vm198_vm0 = vcmp.eq.s32.totalorder %v419_v37, %v184_v47 }
  0xa4   : > { %v235_v49 = vpop.permute.xlu2 %234  ;;  %vm200_vm7 = vcmp.eq.s32.totalorder %v419_v37, %v190_v48 }
  0xa5   : > { %vm247_vm14 = vcmp.eq.s32.totalorder %v419_v37, %v235_v49  ;;  %vm208_vm11 = vmor %vm160_vm9, %vm200_vm7  ;;  %vm161_vm7 = vcmp.eq.s32.totalorder %v419_v37, %v423_v38 }
  0xa6   : > { %vm255_vm15 = vmor %vm207_vm13, %vm247_vm14 }
  0xa7   : > { %v353_v50 = vsel %vm255_vm15, 1.0, %v390_v41 }
  0xa8   : > { %280 = vst.msk [vmem:[%s430_s15 + $0x28] sm:$0xff] %vm274_vm3, %v353_v50 }
  0xaa   : > { %v193_v51 = vpop.permute.xlu1 %192 }
  0xab   : > { %vm201_vm6 = vcmp.eq.s32.totalorder %v419_v37, %v193_v51 }
  0xac   : > { %v223_v52 = vpop.permute.xlu0 %222  ;;  %vm209_vm8 = vmor %vm161_vm7, %vm201_vm6 }
  0xad   : > { %vm243_vm4 = vcmp.eq.s32.totalorder %v419_v37, %v223_v52 }
  0xae   : > { %vm251_vm5 = vmor %vm203_vm2, %vm243_vm4 }
  0xaf   : > { %v349_v53 = vsel %vm251_vm5, 1.0, %v390_v41  ;;  %vm206_vm2 = vmor %vm158_vm1, %vm198_vm0 }
  0xb0   : > { %276 = vst.msk [vmem:[%s430_s15 + $0x8] sm:$0xff] %vm274_vm3, %v349_v53 }
  0xb3   : > { %v226_v54 = vpop.permute.xlu1 %225 }
  0xb4   : > { %vm244_vm12 = vcmp.eq.s32.totalorder %v419_v37, %v226_v54  ;;  %v238_v55 = vpop.permute.xlu0 %237 }
  0xb5   : > { %vm252_vm13 = vmor %vm204_vm10, %vm244_vm12  ;;  %vm248_vm14 = vcmp.eq.s32.totalorder %v419_v37, %v238_v55 }
  0xb6   : > { %v350_v56 = vsel %vm252_vm13, 1.0, %v390_v41  ;;  %vm256_vm15 = vmor %vm208_vm11, %vm248_vm14 }
  0xb7   : > { %277 = vst.msk [vmem:[%s430_s15 + $0x10] sm:$0xff] %vm274_vm3, %v350_v56  ;;  %v354_v57 = vsel %vm256_vm15, 1.0, %v390_v41 }
  0xb8   : > { %281 = vst.msk [vmem:[%s430_s15 + $0x30] sm:$0xff] %vm274_vm3, %v354_v57 }
  0xbb   : > { %v232_v58 = vpop.permute.xlu1 %231 }
  0xbc   : > { %vm246_vm4 = vcmp.eq.s32.totalorder %v419_v37, %v232_v58 }
  0xbd   : > { %vm254_vm5 = vmor %vm206_vm2, %vm246_vm4 }
  0xbe   : > { %v352_v59 = vsel %vm254_vm5, 1.0, %v390_v41 }
  0xbf   : > { %279 = vst.msk [vmem:[%s430_s15 + $0x20] sm:$0xff] %vm274_vm3, %v352_v59 }
  0xc3   : > { %v241_v60 = vpop.permute.xlu1 %240 }
  0xc4   : > { %vm249_vm9 = vcmp.eq.s32.totalorder %v419_v37, %v241_v60 }
  0xc5   : > { %vm257_vm10 = vmor %vm209_vm8, %vm249_vm9 }
  0xc6   : > { %v355_v61 = vsel %vm257_vm10, 1.0, %v390_v41 }
  0xc7   : > { %282 = vst.msk [vmem:[%s430_s15 + $0x38] sm:$0xff] %vm274_vm3, %v355_v61 }
  0xc8 PF: > { %s11_s6 = sadd.s32 1, %s385_s6  }
  0xc9   : > { %p8_p4 = scmp.ge.s32.totalorder %s11_s6, 4  }
  0xcb   :  { %10 = sbr.rel (!%p8_p4) target bundleno = 1 (0x1), region = 54 }

</bundles_post_ra>
